<compile_context>
chip_gen: v6e
topology: v6e:2x2x1
jax: 0.10.0
libtpu: 0.0.40
codegen_flags: <defaults>
</compile_context>

<pallas_src>
import functools

import jax
import jax.numpy as jnp
from jax.experimental import pallas as pl
from jax.experimental.pallas import tpu as pltpu

LN_EPS = 1e-5  # torch.nn.LayerNorm default


def _round_up(a, b):
    return (a + b - 1) // b * b


def _vmem_capacity_bytes():
    """Physical per-core VMEM; conservative fallback (v7x = 64 MiB/TC)."""
    try:
        info = pltpu.get_tpu_info()
        cap = getattr(info, "vmem_capacity_bytes", None)
        if cap:
            return int(cap)
    except Exception:
        pass
    return 64 * 1024 * 1024


def _patch_merge_kernel(x_ref, w_ref, colsum_ref, bias_ref, o_ref, *, inv_k):
    """Fused LayerNorm(4C) + Linear(4C -> 2C, bias=False) on a row tile.

    gamma is pre-folded into the weight, beta into `bias`:
        out = scale * (x @ Wg) - (scale * mean) * colsum + bias
    with scale = rsqrt(var + eps), colsum_j = sum_k Wg[k, j],
         bias_j = sum_k beta_k * W^T[k, j].

    x_ref:      (tm, 4C)  bf16 gathered patch features
    w_ref:      (4C, 2C)  bf16 gamma-folded weight
    colsum_ref: (1, 2C)   f32
    bias_ref:   (1, 2C)   f32
    o_ref:      (tm, 2C)  output tile
    """
    xb = x_ref[...]
    x = xb.astype(jnp.float32)
    # One-pass statistics (E[x^2] - mean^2); slightly less accurate than the
    # two-pass torch reference but guarded and within bf16-level tolerance.
    mean = jnp.sum(x, axis=-1, keepdims=True) * inv_k
    ex2 = jnp.sum(x * x, axis=-1, keepdims=True) * inv_k
    var = jnp.maximum(ex2 - mean * mean, 0.0)
    scale = jax.lax.rsqrt(var + LN_EPS)
    # MXU: bf16 x bf16 -> f32 accumulation.
    z = jnp.dot(xb, w_ref[...], preferred_element_type=jnp.float32)
    out = scale * z - (scale * mean) * colsum_ref[...] + bias_ref[...]
    o_ref[...] = out.astype(o_ref.dtype)


@functools.partial(jax.jit, static_argnames=("tm",))
def patch_merging(x, ln_gamma, ln_beta, w_reduction, *, tm=512):
    """PatchMerging forward.

    Args:
      x:           (B, H, W, C) input features.
      ln_gamma:    (4*C,)  LayerNorm weight.
      ln_beta:     (4*C,)  LayerNorm bias.
      w_reduction: (2*C, 4*C)  Linear weight, PyTorch convention (out, in).
      tm:          target rows per grid step.

    Returns:
      (B, ceil(H/2), ceil(W/2), 2*C) in x.dtype.
    """
    B, H, W, C = x.shape

    # Pad odd spatial dims (matches F.pad(x, (0, 0, 0, W % 2, 0, H % 2))).
    if (H % 2 == 1) or (W % 2 == 1):
        x = jnp.pad(x, ((0, 0), (0, H % 2), (0, W % 2), (0, 0)))
        H, W = x.shape[1], x.shape[2]
    H2, W2 = H // 2, W // 2
    four_c, two_c = 4 * C, 2 * C

    # 2x2 gather, PyTorch concat order [x0, x1, x2, x3].  The strided slices +
    # concat + reshape + bf16 cast form one fusible XLA producer, which
    # allow_input_fusion below lets XLA fold into the kernel's input DMA.
    x0 = x[:, 0::2, 0::2, :]
    x1 = x[:, 1::2, 0::2, :]
    x2 = x[:, 0::2, 1::2, :]
    x3 = x[:, 1::2, 1::2, :]
    xflat = jnp.concatenate([x0, x1, x2, x3], axis=-1).reshape(-1, four_c)
    xflat = xflat.astype(jnp.bfloat16)  # bf16 activation streaming
    n_rows = xflat.shape[0]             # B * H2 * W2

    out_dtype = x.dtype
    out_itemsize = jnp.dtype(out_dtype).itemsize

    # gamma/beta fold (tiny one-off f32 ops).
    w_t = w_reduction.astype(jnp.float32).T                 # (4C, 2C)
    w_fold_f32 = w_t * ln_gamma.astype(jnp.float32)[:, None]
    w_fold = w_fold_f32.astype(jnp.bfloat16)                # (4C, 2C) bf16
    colsum = jnp.sum(w_fold_f32, axis=0, keepdims=True)     # (1, 2C) f32
    bias = ln_beta.astype(jnp.float32)[None, :] @ w_t       # (1, 2C) f32

    # ---- Row tile selection -------------------------------------------------
    row_align = 16  # bf16 sublane packing (also multiple of 8 for f32 output)
    if n_rows <= row_align:
        tm_eff = n_rows  # single block; full-dim block shapes are legal
    else:
        tm_eff = min(
            _round_up(tm, row_align),
            # >= 2 grid steps so both v7x TensorCores get work.
            _round_up(-(-n_rows // 2), row_align),
        )

    # Generation-aware VMEM budget (v7x: 64 MiB/TC; v5e/v6e: 128 MiB).
    vmem_cap = _vmem_capacity_bytes()
    budget = max(32 * 1024 * 1024, min(vmem_cap * 3 // 4, 100 * 1024 * 1024))

    def _vmem_bytes(rows):
        return (
            2 * rows * four_c * 2              # double-buffered bf16 x tiles
            + 2 * rows * two_c * out_itemsize  # double-buffered output tiles
            + 2 * four_c * two_c * 2           # bf16 weight (double-buffered)
            + 4 * two_c * 4                    # colsum + bias
            + 3 * rows * four_c * 4            # f32 temporaries (x, x*x)
            + 2 * rows * two_c * 4             # z / epilogue temporaries
            + (2 << 20)                        # headroom
        )

    while tm_eff > row_align and _vmem_bytes(tm_eff) > budget:
        tm_eff -= row_align
    vmem_limit = int(min(max(_vmem_bytes(tm_eff), 32 * 1024 * 1024), budget))

    grid = (pl.cdiv(n_rows, tm_eff),)  # partial last block masked by Pallas

    flops = 2 * n_rows * four_c * two_c + 10 * n_rows * four_c
    bytes_accessed = (
        n_rows * four_c * 2
        + n_rows * two_c * out_itemsize
        + four_c * two_c * 2
        + 4 * two_c * 4
    )

    kernel = functools.partial(_patch_merge_kernel, inv_k=1.0 / float(four_c))

    out = pl.pallas_call(
        kernel,
        out_shape=jax.ShapeDtypeStruct((n_rows, two_c), out_dtype),
        grid_spec=pltpu.PrefetchScalarGridSpec(
            num_scalar_prefetch=0,
            grid=grid,
            in_specs=[
                pl.BlockSpec((tm_eff, four_c), lambda i: (i, 0)),
                pl.BlockSpec((four_c, two_c), lambda i: (0, 0)),
                pl.BlockSpec((1, two_c), lambda i: (0, 0)),
                pl.BlockSpec((1, two_c), lambda i: (0, 0)),
            ],
            out_specs=pl.BlockSpec((tm_eff, two_c), lambda i: (i, 0)),
        ),
        compiler_params=pltpu.CompilerParams(
            dimension_semantics=("parallel",),
            vmem_limit_bytes=vmem_limit,
            allow_input_fusion=[True, False, False, False],
        ),
        cost_estimate=pl.CostEstimate(
            flops=int(flops),
            transcendentals=int(n_rows),
            bytes_accessed=int(bytes_accessed),
        ),
    )(xflat, w_fold, colsum, bias)

    return out.reshape(B, H2, W2, two_c)


def _reference(x, ln_gamma, ln_beta, w_reduction):
    """Pure-JAX f32 reference mirroring the PyTorch forward."""
    B, H, W, C = x.shape
    if (H % 2 == 1) or (W % 2 == 1):
        x = jnp.pad(x, ((0, 0), (0, H % 2), (0, W % 2), (0, 0)))
    x0 = x[:, 0::2, 0::2, :]
    x1 = x[:, 1::2, 0::2, :]
    x2 = x[:, 0::2, 1::2, :]
    x3 = x[:, 1::2, 1::2, :]
    xc = jnp.concatenate([x0, x1, x2, x3], -1).astype(jnp.float32)
    mean = jnp.mean(xc, axis=-1, keepdims=True)
    var = jnp.mean((xc - mean) ** 2, axis=-1, keepdims=True)
    xn = (xc - mean) / jnp.sqrt(var + LN_EPS)
    y = xn * ln_gamma.astype(jnp.float32) + ln_beta.astype(jnp.float32)
    return jnp.einsum("bhwc,oc->bhwo", y, w_reduction.astype(jnp.float32))


if __name__ == "__main__":
    key = jax.random.PRNGKey(0)
    k_x, k_w, k_g, k_b = jax.random.split(key, 4)

    # Small deterministic example: B=2, H=W=8, C=32  ->  4C=128, 2C=64.
    B, H, W, C = 2, 8, 8, 32
    x = jax.random.normal(k_x, (B, H, W, C), dtype=jnp.float32)

    # nn.Linear(4*dim, 2*dim, bias=False): weight shape (2C, 4C)
    w_reduction = jax.random.normal(k_w, (2 * C, 4 * C), dtype=jnp.float32) * 0.05
    # nn.LayerNorm(4*dim): perturb defaults slightly to be non-trivial
    ln_gamma = 1.0 + 0.1 * jax.random.normal(k_g, (4 * C,), dtype=jnp.float32)
    ln_beta = 0.1 * jax.random.normal(k_b, (4 * C,), dtype=jnp.float32)

    out = jax.block_until_ready(patch_merging(x, ln_gamma, ln_beta, w_reduction))
    ref = _reference(x, ln_gamma, ln_beta, w_reduction)
    assert out.shape == (B, H // 2, W // 2, 2 * C), out.shape
    # bf16 activation streaming + bf16 MXU (f32 accumulation) tolerance.
    max_err = float(jnp.max(jnp.abs(out.astype(jnp.float32) - ref)))
    assert max_err < 4e-2, max_err

    # Also exercise the odd-H/W padding and partial/small-row-tile paths.
    B2, H3, W3 = 1, 7, 5
    x_odd = jax.random.normal(k_x, (B2, H3, W3, C), dtype=jnp.float32)
    out_odd = jax.block_until_ready(
        patch_merging(x_odd, ln_gamma, ln_beta, w_reduction)
    )
    ref_odd = _reference(x_odd, ln_gamma, ln_beta, w_reduction)
    assert out_odd.shape == (B2, (H3 + 1) // 2, (W3 + 1) // 2, 2 * C), out_odd.shape
    max_err_odd = float(jnp.max(jnp.abs(out_odd.astype(jnp.float32) - ref_odd)))
    assert max_err_odd < 4e-2, max_err_odd

    print("KERNEL_OK")
</pallas_src>

<mosaic_0001>
module attributes {stable_mosaic.version = 11 : i64} {
  func.func @_patch_merge_kernel(%arg0: i32, %arg1: memref<16x128xbf16, #tpu.memory_space<vmem>>, %arg2: memref<128x64xbf16, #tpu.memory_space<vmem>>, %arg3: memref<1x64xf32, #tpu.memory_space<vmem>>, %arg4: memref<1x64xf32, #tpu.memory_space<vmem>>, %arg5: memref<16x64xf32, #tpu.memory_space<vmem>>) attributes {dimension_semantics = [#tpu.dimension_semantics<parallel>], iteration_bounds = array<i64: 2>, scalar_prefetch = 0 : i64, scratch_operands = 0 : i64, tpu.core_type = #tpu.core_type<tc>, window_params = [{transform_indices = @transform_0, window_bounds = array<i64: 16, 128>}, {pipeline_mode = #tpu.pipeline_mode<synchronous>, transform_indices = @transform_1, window_bounds = array<i64: 128, 64>}, {pipeline_mode = #tpu.pipeline_mode<synchronous>, transform_indices = @transform_2, window_bounds = array<i64: 1, 64>}, {pipeline_mode = #tpu.pipeline_mode<synchronous>, transform_indices = @transform_3, window_bounds = array<i64: 1, 64>}, {transform_indices = @transform_4, window_bounds = array<i64: 16, 64>}]} {
    %c0 = arith.constant 0 : index
    %c0_0 = arith.constant 0 : index
    %0 = vector.load %arg1[%c0, %c0_0] : memref<16x128xbf16, #tpu.memory_space<vmem>>, vector<16x128xbf16>
    %1 = arith.extf %0 : vector<16x128xbf16> to vector<16x128xf32>
    %cst = arith.constant dense<0.000000e+00> : vector<16xf32>
    %2 = vector.multi_reduction <add>, %1, %cst [1] : vector<16x128xf32> to vector<16xf32>
    %3 = vector.shape_cast %2 : vector<16xf32> to vector<16x1xf32>
    %cst_1 = arith.constant 7.812500e-03 : f32
    %4 = vector.broadcast %cst_1 : f32 to vector<16x1xf32>
    %5 = arith.mulf %3, %4 : vector<16x1xf32>
    %6 = arith.mulf %1, %1 : vector<16x128xf32>
    %cst_2 = arith.constant dense<0.000000e+00> : vector<16xf32>
    %7 = vector.multi_reduction <add>, %6, %cst_2 [1] : vector<16x128xf32> to vector<16xf32>
    %8 = vector.shape_cast %7 : vector<16xf32> to vector<16x1xf32>
    %cst_3 = arith.constant 7.812500e-03 : f32
    %9 = vector.broadcast %cst_3 : f32 to vector<16x1xf32>
    %10 = arith.mulf %8, %9 : vector<16x1xf32>
    %11 = arith.mulf %5, %5 : vector<16x1xf32>
    %12 = arith.subf %10, %11 : vector<16x1xf32>
    %cst_4 = arith.constant 0.000000e+00 : f32
    %13 = vector.broadcast %cst_4 : f32 to vector<16x1xf32>
    %14 = arith.maximumf %12, %13 : vector<16x1xf32>
    %cst_5 = arith.constant 9.99999974E-6 : f32
    %15 = vector.broadcast %cst_5 : f32 to vector<16x1xf32>
    %16 = arith.addf %14, %15 : vector<16x1xf32>
    %17 = math.rsqrt %16 : vector<16x1xf32>
    %c0_6 = arith.constant 0 : index
    %c0_7 = arith.constant 0 : index
    %18 = vector.load %arg2[%c0_6, %c0_7] : memref<128x64xbf16, #tpu.memory_space<vmem>>, vector<128x64xbf16>
    %cst_8 = arith.constant dense<0.000000e+00> : vector<16x64xf32>
    %19 = tpu.matmul %0, %18, %cst_8 {dimension_numbers = #tpu.dot_dimension_numbers<[1], [0], [0], [1], [0, 0, 1, 1], [], []>} : vector<16x128xbf16>, vector<128x64xbf16>, vector<16x64xf32> -> vector<16x64xf32>
    %20 = vector.broadcast %17 : vector<16x1xf32> to vector<16x64xf32>
    %21 = arith.mulf %20, %19 : vector<16x64xf32>
    %22 = arith.mulf %17, %5 : vector<16x1xf32>
    %c0_9 = arith.constant 0 : index
    %c0_10 = arith.constant 0 : index
    %23 = vector.load %arg3[%c0_9, %c0_10] : memref<1x64xf32, #tpu.memory_space<vmem>>, vector<1x64xf32>
    %24 = vector.broadcast %22 : vector<16x1xf32> to vector<16x64xf32>
    %25 = vector.broadcast %23 : vector<1x64xf32> to vector<16x64xf32>
    %26 = arith.mulf %24, %25 : vector<16x64xf32>
    %27 = arith.subf %21, %26 : vector<16x64xf32>
    %c0_11 = arith.constant 0 : index
    %c0_12 = arith.constant 0 : index
    %28 = vector.load %arg4[%c0_11, %c0_12] : memref<1x64xf32, #tpu.memory_space<vmem>>, vector<1x64xf32>
    %29 = vector.broadcast %28 : vector<1x64xf32> to vector<16x64xf32>
    %30 = arith.addf %27, %29 : vector<16x64xf32>
    %c0_13 = arith.constant 0 : index
    %c0_14 = arith.constant 0 : index
    %31 = vector.load %arg5[%c0_13, %c0_14] : memref<16x64xf32, #tpu.memory_space<vmem>>, vector<16x64xf32>
    tpu.vector_store %arg5[%c0_13, %c0_14], %30 {strides = array<i32>} : memref<16x64xf32, #tpu.memory_space<vmem>>, vector<16x64xf32>,
    return
  }
  func.func @transform_0(%arg0: i32) -> (i32, i32) {
    %c0_i32 = arith.constant 0 : i32
    %c0_i32_0 = arith.constant 0 : i32
    return %arg0, %c0_i32 : i32, i32
  }
  func.func @transform_1(%arg0: i32) -> (i32, i32) {
    %c0_i32 = arith.constant 0 : i32
    %c0_i32_0 = arith.constant 0 : i32
    %c0_i32_1 = arith.constant 0 : i32
    return %c0_i32, %c0_i32_0 : i32, i32
  }
  func.func @transform_2(%arg0: i32) -> (i32, i32) {
    %c0_i32 = arith.constant 0 : i32
    %c0_i32_0 = arith.constant 0 : i32
    %c0_i32_1 = arith.constant 0 : i32
    return %c0_i32, %c0_i32_0 : i32, i32
  }
  func.func @transform_3(%arg0: i32) -> (i32, i32) {
    %c0_i32 = arith.constant 0 : i32
    %c0_i32_0 = arith.constant 0 : i32
    %c0_i32_1 = arith.constant 0 : i32
    return %c0_i32, %c0_i32_0 : i32, i32
  }
  func.func @transform_4(%arg0: i32) -> (i32, i32) {
    %c0_i32 = arith.constant 0 : i32
    %c0_i32_0 = arith.constant 0 : i32
    return %arg0, %c0_i32 : i32, i32
  }
}

</mosaic_0001>

<bundles_post_ra>
// kernel: patch_merging.1
= control target key start
LH: loop header
LB: loop body
LE: loop exit
PB: predicated region body
PF: predicated region fallthrough
CT: control target
= control target key end

     0   :  { %9 = vsyncpa [#allocation3], 0  ;;  %s775_s0 = inlined_call_operand.vmem [shape: bf16[32,128], index: 0, kind: input, shape index: {}]   ;;  %s776_s1 = inlined_call_operand.vmem [shape: bf16[128,64], index: 1, kind: input, shape index: {}]   ;;  %s777_s2 = inlined_call_operand.vmem [shape: f32[1,64], index: 2, kind: input, shape index: {}]   ;;  %s778_s3 = inlined_call_operand.vmem [shape: f32[1,64], index: 3, kind: input, shape index: {}]   ;;  %s779_s4 = inlined_call_operand.hbm [shape: f32[32,64], index: 4, kind: output, shape index: {}]  }
   0x1   :  { %11 = vsyncpa [#allocation3 + $0x1], 0  ;;  %s644_s15 = smov 0   ;;  %s646_s16 = smov 0  }
   0x2   :  { %s648_s17 = smov 0   ;;  %s650_s18 = smov 0  }
   0x3 LB: > { %s665_s19 = sadd.s32 4294967295, %s612_s18   ;;  %s442_s20 = sadd.s32 4294967294, %s612_s18   ;;  %s612_s18 = sphi %s650_s18, %s785_s18   ;;  %s608_s17 = sphi %s648_s17, %s784_s17   ;;  %s604_s16 = sphi %s646_s16, %s783_s16   ;;  %s600_s15 = sphi %s644_s15, %s782_s15  }
   0x4   : > { %s669_s21 = sadd.s32 1, %s612_s18   ;;  %s113_s22 = sadd.s32 1, %s608_s17 }
   0x5   : > { %s110_s23 = ssub.s32 %s612_s18, %s669_s21  ;;  %p123_p0 = scmp.ne.s32.totalorder %s608_s17, %s604_s16 }
   0x6   : > { %p111_p1 = scmp.eq.s32.totalorder %s110_s23, 0  ;;  %p124_p2 = scmp.eq.s32.totalorder %s665_s19, 1 }
   0x7   : > { %p129_p3 = scmp.ne.s32.totalorder %s604_s16, %s600_s15  ;;  %p130_p4 = scmp.eq.s32.totalorder %s442_s20, 1 }
   0x8   : > { %s680_s24 = scalar_select %p111_p1, %s608_s17, %s113_s22  }
   0x9   : > { %p682_p5 = por %p124_p2, %p123_p0  ;;  %p686_p6 = por %p130_p4, %p129_p3 }
   0xa   : > { %p445_p7 = scmp.ge.s32.totalorder %s612_s18, 1  ;;  %p166_p8 = scmp.lt.s32.totalorder %s612_s18, 3 }
   0xc   : > { %p167_p9 = pnand %p445_p7, %p166_p8 }
   0xd   : > { %s447_s5 = sshll.u32 (!%p167_p9), %s665_s19, 1  ;;  %s616_s27 = smov (!%p167_p9), [#allocation2]  }
   0xe   : > { %170 = sbr.rel (%p167_p9) target bundleno = 269 (0x10d), region = 36  ;;  %p193_p10 = scmp.lt.s32.totalorder (!%p167_p9), %s447_s5, 3 }
   0xf   : > { %s556_s28 = sshll.u32 (!%p167_p9), %s616_s27, 4  ;;  %s557_s28 = int_to_ptr.vmem [resolvable:$false] %s556_s28 }
  0x10   : > { %s558_s29 = scalar_lea.vmem (!%p167_p9), %s557_s28, 512 }
  0x13   : > { %v538_v0 = vld [vmem:[%s776_s1 + $0x38] sm:$0xff]   ;;  %v614_v1 = vmov 0.0   ;;  %v539_v2 = vld [vmem:[%s776_s1 + $0x30] sm:$0xff]   ;;  %vm615_vm0 = vmmov 0   ;;  %s787_s5 = smov (!%p193_p10, %s447_s5), 3  ;;  %v540_v3 = vld [vmem:[%s776_s1 + $0x28] sm:$0xff]  }
  0x14   : > { %475 = vmatprep.subr.bf16.mxu0 %v614_v1  ;;  %491 = vmatprep.mubr.msk.bf16.mxu0 %vm615_vm0, %v614_v1  ;;  %s448_s8 = sshll.u32 %s787_s5, 2  ;;  %v541_v5 = vld [vmem:[%s776_s1 + $0x20] sm:$0xff]   ;;  %v542_v9 = vld [vmem:[%s776_s1 + $0x18] sm:$0xff]   ;;  %v543_v11 = vld [vmem:[%s776_s1 + $0x10] sm:$0xff]   ;;  %s189_s5 = sand.u32 1, %s604_s16   ;;  %vm363_vm1 = vcmask 523264  }
  0x15   : > { %476 = vmatpush3.bf16.msra.mxu0 %v538_v0  ;;  %s196_s11 = scalar_lea.vmem %s775_s0, %s448_s8  ;;  %v544_v12 = vld [vmem:[%s776_s1 + $0x8] sm:$0xff]   ;;  %v545_v13 = vld [vmem:[%s776_s1] sm:$0xff]   ;;  %s446_s8 = sshll.u32 %s189_s5, 4 }
  0x16   : > { %477 = vmatprep.subr.bf16.mxu0 %v614_v1  ;;  %v200_v4 = vld [vmem:[%s196_s11] sm:$0xff]   ;;  %s465_s11 = sshll.u32 %s665_s19, 8  ;;  %s191_s12 = scalar_lea.vmem [#allocation2], %s446_s8 }
  0x17   : > { %v202_v6 = vunpack.c.l.bf16 %v200_v4  ;;  %v203_v7 = vunpack.c.h.bf16 %v200_v4  ;;  %v458_v33 = vld [vmem:[%s777_s2] ss:$0 sm:$0xff]  ;;  %s380_s13 = sshll.u32 %s191_s12, 4  ;;  %s731_s22 = scalar_lea.hbm %s779_s4, %s465_s11  ;;  %s733_s13 = int_to_ptr.vmem [resolvable:$true] %s380_s13 }
  0x18   : > { %v459_v38 = vld [vmem:[%s778_s3] ss:$0 sm:$0xff]  ;;  %s735_s23 = scalar_lea.sflag [#allocation3], %s189_s5  ;;  %s552_s19 = scalar_lea.vmem %s733_s13, 256 }
  0x19   : > { %478 = vmatpush3.bf16.msra.mxu0 %v539_v2  ;;  %204 = vadd.xlane.f32.xlu0 %v202_v6  ;;  %v210_v8 = vmul.f32 %v202_v6, %v202_v6  ;;  %v211_v10 = vmul.f32 %v203_v7, %v203_v7  ;;  %p553_p11 = scmp.ne.s32.totalorder %s733_s13, %s552_s19  ;;  %p559_p0 = scmp.lt.s32.totalorder %s733_s13, %s557_s28 }
  0x1a   : > { %479 = vmatprep.subr.bf16.mxu0 %v614_v1  ;;  %p560_p1 = scmp.lt.s32.totalorder %s558_s29, %s552_s19 }
  0x1b   : > { %212 = vadd.xlane.f32.xlu1 %v210_v8  ;;  %p554_p12 = pnand %p553_p11, %p682_p5 }
  0x1c   : > { %p561_p2 = por %p560_p1, %p559_p0 }
  0x1d   : > { %480 = vmatpush3.bf16.msra.mxu0 %v540_v3  ;;  %206 = vadd.xlane.f32.xlu0 %v203_v7  ;;  %p555_p13 = pneg %p554_p12 }
  0x1e   : > { %481 = vmatprep.subr.bf16.mxu0 %v614_v1 }
  0x1f   : > { %214 = vadd.xlane.f32.xlu1 %v211_v10  ;;  %p562_p3 = pnand %p561_p2, %p555_p13 }
  0x21   : > { %482 = vmatpush3.bf16.msra.mxu0 %v541_v5 }
  0x22   : > { %483 = vmatprep.subr.bf16.mxu0 %v614_v1 }
  0x25   : > { %484 = vmatpush3.bf16.msra.mxu0 %v542_v9 }
  0x26   : > { %485 = vmatprep.subr.bf16.mxu0 %v614_v1 }
  0x29   : > { %486 = vmatpush3.bf16.msra.mxu0 %v543_v11 }
  0x2a   : > { %487 = vmatprep.subr.bf16.mxu0 %v614_v1 }
  0x2d   : > { %488 = vmatpush3.bf16.msra.mxu0 %v544_v12 }
  0x2e   : > { %489 = vmatprep.subr.bf16.mxu0 %v614_v1 }
  0x31   : > { %490 = vmatpush3.bf16.msra.mxu0 %v545_v13 }
  0x34   : > { %492 = vmatmul.mubr.bf16.vlgmr.msra.gmra.mxu0 %v200_v4 }
  0xa2   : > { %v205_v14 = vpop.xlane.xlu0 %204 }
  0xa3   : > { %v208_v16 = vmul.f32 0.0078125, %v205_v14 }
  0xa4   : > { %v213_v15 = vpop.xlane.xlu1 %212 }
  0xa5   : > { %v218_v18 = vmul.f32 %v208_v16, %v208_v16  ;;  %v216_v19 = vmul.f32 0.0078125, %v213_v15 }
  0xa6   : > { %v207_v17 = vpop.xlane.xlu0 %206 }
  0xa7   : > { %v209_v20 = vmul.f32 0.0078125, %v207_v17  ;;  %v220_v22 = vsub.f32 %v216_v19, %v218_v18 }
  0xa8   : > { %v215_v21 = vpop.xlane.xlu1 %214 }
  0xa9   : > { %v219_v23 = vmul.f32 %v209_v20, %v209_v20  ;;  %v217_v24 = vmul.f32 0.0078125, %v215_v21  ;;  %v222_v25 = vmax.f32 %v220_v22, 0.0 }
  0xab   : > { %v221_v26 = vsub.f32 %v217_v24, %v219_v23  ;;  %v224_v27 = vadd.f32 1e-05, %v222_v25 }
  0xad   : > { %v223_v28 = vmax.f32 %v221_v26, 0.0  ;;  %548 = vrsqrt.f32 %v224_v27 }
  0xaf   : > { %v225_v29 = vadd.f32 1e-05, %v223_v28 }
  0xb1   : > { %550 = vrsqrt.f32 %v225_v29 }
  0xba   : > { %v549_v30 = vpop.eup %548 }
  0xbb   : > { %v341_v31 = vmul.f32 %v549_v30, %v208_v16 }
  0xbd   : > { %v350_v36 = vmul.f32 %v458_v33, %v341_v31 }
  0xbe   : > { %v551_v32 = vpop.eup %550 }
  0xbf   : > { %v342_v37 = vmul.f32 %v551_v32, %v209_v20 }
  0xc1   : > { %v351_v44 = vmul.f32 %v458_v33, %v342_v37 }
  0xf4   : > { %v332_v34 = vpop.f32.mrf.mxu0 }
  0xf5   : > { %v339_v35 = vmul.f32 %v549_v30, %v332_v34 }
  0xf6   : > { %v493_v39 = vpop.f32.mrf.mxu0 }
  0xf7   : > { %v352_v40 = vsub.f32 %v339_v35, %v350_v36 }
  0xf8   : > { %v335_v41 = vpop.f32.mrf.mxu0 }
  0xf9   : > { %v361_v42 = vadd.f32 %v459_v38, %v352_v40  ;;  %v340_v43 = vmul.f32 %v551_v32, %v335_v41 }
  0xfa   : > { %v494_v45 = vpop.f32.mrf.mxu0 }
  0xfb   : > { %364 = vst.msk [vmem:[%s191_s12] sm:$0xff] %vm363_vm1, %v361_v42  ;;  %v353_v46 = vsub.f32 %v340_v43, %v351_v44 }
  0xfd   : > { %v362_v47 = vadd.f32 %v459_v38, %v353_v46 }
  0xff   : > { %365 = vst.msk [vmem:[%s191_s12 + $0x8] sm:$0xff] %vm363_vm1, %v362_v47 }
 0x100   : > { %565 = shalt.err (!%p562_p3)
}
 0x101   : > { %s566_s30 = scalar_lea.hbm %s731_s22, 256  ;;  %s570_s7 = scalar_lea.hbm %s779_s4, 512 }
 0x102   : > { %p567_p4 = scmp.ne.s32.totalorder %s731_s22, %s566_s30  ;;  %p571_p9 = scmp.lt.s32.totalorder %s731_s22, %s779_s4 }
 0x103   : > { %p572_p10 = scmp.lt.s32.totalorder %s570_s7, %s566_s30 }
 0x104   : > { %p568_p7 = pnand %p567_p4, %p682_p5 }
 0x105   : > { %p573_p11 = por %p572_p10, %p571_p9 }
 0x106   : > { %p569_p8 = pneg %p568_p7 }
 0x108   : > { %p574_p12 = pnand %p573_p11, %p569_p8 }
 0x10a   : > { %577 = shalt.err (!%p574_p12)
}
 0x10b   : > { %s617_s10 = smov 128   ;;  %s618_s11 = smov 8  }
 0x10c   : > { %495 = dma.vmem_to_hbm [thread:$0]  (%p682_p5), %s733_s13, 256, %s731_s22, %s735_s23, %s617_s10, %s617_s10, %s618_s11  }
 0x10d PF: > { %p501_p13 = scmp.ge.s32.totalorder %s612_s18, 2  ;;  %s395_s12 = sand.u32 1, %s600_s15  }
 0x10e   : > { %s396_s14 = scalar_lea.sflag [#allocation3], %s395_s12 }
 0x10f   : > { %p498_p0 = pnand %p501_p13, %p686_p6 }
 0x111   : > { %p499_p1 = pneg %p498_p0 }
 0x113   : > { %595 = dma.done.wait (%p499_p1), %s396_s14, 256  }
 0x114   : > { %597 = vsyncadd (%p499_p1), %s396_s14, 4294967040  ;;  %p14_p2 = scmp.ge.s32.totalorder %s669_s21, 4   ;;  %s782_s15 = smov %s604_s16 }
 0x115   : > { %s783_s16 = smov %s608_s17  ;;  %s784_s17 = smov %s680_s24 }
 0x116   : > { %s785_s18 = smov %s669_s21  ;;  %16 = sbr.rel (!%p14_p2) target bundleno = 3 (0x3), region = 71 }
 0x11b   :  { %401 = vsyncpa [#allocation3], 1 }
 0x11c   :  { %403 = vsyncpa [#allocation3 + $0x1], 1 }

</bundles_post_ra>
